<compile_context>
chip_gen: v5e
topology: v5e:2x2
jax: 0.10.0
libtpu: 0.0.40
codegen_flags: <defaults>
</compile_context>

<pallas_src>
import functools

import jax
import jax.numpy as jnp
from jax.experimental import pallas as pl
from jax.experimental.pallas import tpu as pltpu


def _round_up(x, m):
    return ((x + m - 1) // m) * m


def _cdiv(a, b):
    return (a + b - 1) // b


def _choose_tiling(batch, tile_batch):
    """tb multiple of 128 (lane axis of the streamed blocks / output row); even tile
    count whenever the batch is big enough so both v7x TensorCores get half the grid."""
    tb_cap = max(128, _round_up(min(tile_batch, batch), 128))
    if batch <= tb_cap and batch <= 512:
        tb = _round_up(batch, 128)
        return tb, tb, 1
    num_tiles = max(2, _cdiv(batch, tb_cap))
    if num_tiles % 2:
        num_tiles += 1                     # even split -> megacore-friendly on v7x
    tb = _round_up(_cdiv(batch, num_tiles), 128)
    return tb, num_tiles * tb, num_tiles


def _make_kernel(num_hidden_layers: int):
    """Fused gather + encoder + scorer for a static number of scorer hidden layers."""

    def kernel(word_ref, vec_ref,
               tbl_ref, b1_ref, wa_ref, wv_ref, bin_ref,
               *rest):
        hidden_refs = rest[:2 * num_hidden_layers]
        wout_ref, bout_ref, o_ref = rest[2 * num_hidden_layers:]
        f32, bf16 = jnp.float32, jnp.bfloat16

        kp = tbl_ref.shape[1]
        n_word, tb = word_ref.shape

        # ---- in-kernel embedding gather: indices were offset in the wrapper so the
        # per-feature vocab ranges are disjoint rows of one combined folded table;
        # build a multi-hot (Kp, TB) and contract it on the MXU.
        idx = word_ref[...]                                        # (n_word, tb) int32
        row_ids = jax.lax.broadcasted_iota(jnp.int32, (kp, tb), 0)
        hit = row_ids == idx[0:1, :]
        for i in range(1, n_word):
            hit = hit | (row_ids == idx[i:i + 1, :])
        mh = jnp.where(hit, 1.0, 0.0).astype(bf16)                 # (kp, tb)

        # emb^T == (sum_i table_i[idx_i]) @ enc_w1, with the fold precomputed offline.
        emb = jnp.dot(tbl_ref[...], mh, preferred_element_type=f32)      # (H, tb) f32
        h = jnp.maximum(emb + b1_ref[...], 0.0)

        # Scorer in-layer; the encoder's second Linear is folded into wa / bin
        # (the reference model has no ReLU between them).
        v = (jnp.dot(wa_ref[...], h.astype(bf16), preferred_element_type=f32)
             + jnp.dot(wv_ref[...], vec_ref[...], preferred_element_type=f32)
             + bin_ref[...])

        for i in range(num_hidden_layers):
            w = hidden_refs[2 * i][...]
            b = hidden_refs[2 * i + 1][...]
            v = jnp.dot(w, jnp.maximum(v, 0.0).astype(bf16),
                        preferred_element_type=f32) + b

        v = jnp.maximum(v, 0.0)
        # Out layer: w_out zero-padded to 8 rows (row 0 real) for a comfortable MXU M;
        # result row is already lane-dense (1, TB) -> unmasked stores.
        score8 = jnp.dot(wout_ref[...], v.astype(bf16), preferred_element_type=f32)
        o_ref[...] = score8[0:1, :] + bout_ref[...]

    return kernel


def prepare_params(params):
    """Fold everything foldable ONCE (cache and reuse across forward calls):
       * each embedding table through its block of the encoder first Linear,
       * encoder second Linear through the scorer in-layer (no ReLU between them),
       * transpose all weights to the kernel's feature-major orientation,
       * cast matmul operands to bf16 (accumulation stays f32 in-kernel)."""
    f32, bf16 = jnp.float32, jnp.bfloat16
    H = params["enc_w2"].shape[0]
    vocab_sizes = [int(t.shape[0]) for t in params["embeddings"]]

    offsets, total = [], 0
    for vsz in vocab_sizes:
        offsets.append(total)
        total += vsz
    kp = _round_up(total, 8)

    folded = [params["embeddings"][i] @ params["enc_w1"][i * H:(i + 1) * H, :]
              for i in range(len(vocab_sizes))]                    # each (V_i, H) f32
    tbl = jnp.concatenate(folded, axis=0)                          # (K, H)
    tbl = jnp.pad(tbl, ((0, kp - total), (0, 0)))

    w_in = params["cls_w_in"]
    win_enc, win_vec = w_in[:H], w_in[H:]
    w_out8 = jnp.zeros((8, H), f32).at[0].set(params["cls_w_out"].reshape(H))

    return {
        "offsets": jnp.asarray(offsets, jnp.int32),                # per-feature row offset
        "tbl_t": tbl.T.astype(bf16),                               # (H, Kp)
        "b1": params["enc_b1"].reshape(H, 1).astype(f32),
        "wa": (params["enc_w2"] @ win_enc).T.astype(bf16),         # (H, H)  (W2 @ Win_enc)^T
        "wv": win_vec.T.astype(bf16),                              # (H, V)
        "b_in": (params["cls_b_in"]
                 + params["enc_b2"] @ win_enc).reshape(H, 1).astype(f32),
        "hidden": [(w.T.astype(bf16), b.reshape(H, 1).astype(f32))
                   for (w, b) in params["cls_hidden"]],
        "w_out8": w_out8.astype(bf16),                             # (8, H), row 0 real
        "b_out": params["cls_b_out"].reshape(1, 1).astype(f32),
    }


@functools.partial(jax.jit, static_argnames=("tile_batch",))
def features_dnn_evaluator_forward(word_features_batch, vec_features_batch, prep,
                                   tile_batch=8192):
    f32, bf16 = jnp.float32, jnp.bfloat16
    batch, vec_size = vec_features_batch.shape
    hidden_size = prep["wa"].shape[0]
    num_hidden = len(prep["hidden"])

    tb, padded, num_tiles = _choose_tiling(batch, tile_batch)

    # Feature-major streams: batch rides the 128-lane axis.
    idx_t = (word_features_batch.astype(jnp.int32) + prep["offsets"][None, :]).T  # (n_word, B)
    vec_t = vec_features_batch.astype(bf16).T                                     # (V, B)
    if padded != batch:
        idx_t = jnp.pad(idx_t, ((0, 0), (0, padded - batch)))
        vec_t = jnp.pad(vec_t, ((0, 0), (0, padded - batch)))

    args = [idx_t, vec_t, prep["tbl_t"], prep["b1"], prep["wa"], prep["wv"], prep["b_in"]]
    for (w, b) in prep["hidden"]:
        args.append(w)
        args.append(b)
    args.append(prep["w_out8"])
    args.append(prep["b_out"])

    def stream_spec(a):
        return pl.BlockSpec((a.shape[0], tb), lambda i: (0, i))

    def resident_spec(a):
        # Constant block index -> Mosaic keeps it VMEM-resident across grid steps.
        return pl.BlockSpec(a.shape, lambda i: (0, 0))

    in_specs = [stream_spec(idx_t), stream_spec(vec_t)] + [resident_spec(a) for a in args[2:]]
    out_specs = pl.BlockSpec((1, tb), lambda i: (i, 0))            # lane-dense output row

    n_word = idx_t.shape[0]
    kp = prep["tbl_t"].shape[1]
    flops_per_row = 2 * (kp * hidden_size
                         + hidden_size * hidden_size * (1 + num_hidden)
                         + vec_size * hidden_size + hidden_size)
    weight_bytes = sum(int(a.size) * a.dtype.itemsize for a in args[2:])
    bytes_accessed = padded * (n_word * 4 + vec_size * 2 + 4) + weight_bytes

    out = pl.pallas_call(
        _make_kernel(num_hidden),
        grid=(num_tiles,),
        in_specs=in_specs,
        out_specs=out_specs,
        out_shape=jax.ShapeDtypeStruct((num_tiles, tb), f32),
        compiler_params=pltpu.CompilerParams(
            dimension_semantics=("parallel",),       # megacore sharding on v7x; no-op v5e/v6e
            vmem_limit_bytes=32 * 1024 * 1024,       # ample for tb<=8192; headroom under v7x 64 MiB
        ),
        cost_estimate=pl.CostEstimate(
            flops=int(padded * flops_per_row),
            transcendentals=0,
            bytes_accessed=int(bytes_accessed),
        ),
    )(*args)
    return out.reshape(padded)[:batch]


def init_params(vocab_sizes, vec_size, hidden_size, num_layers, seed=0):
    """Deterministic synthetic parameters matching the PyTorch module's shapes."""
    key = jax.random.PRNGKey(seed)

    def nxt():
        nonlocal key
        key, sub = jax.random.split(key)
        return sub

    scale = 0.1
    n = len(vocab_sizes)
    params = {}
    params["embeddings"] = [scale * jax.random.normal(nxt(), (v, hidden_size), jnp.float32)
                            for v in vocab_sizes]
    params["enc_w1"] = scale * jax.random.normal(nxt(), (n * hidden_size, hidden_size), jnp.float32)
    params["enc_b1"] = scale * jax.random.normal(nxt(), (hidden_size,), jnp.float32)
    params["enc_w2"] = scale * jax.random.normal(nxt(), (hidden_size, hidden_size), jnp.float32)
    params["enc_b2"] = scale * jax.random.normal(nxt(), (hidden_size,), jnp.float32)
    params["cls_w_in"] = scale * jax.random.normal(
        nxt(), (hidden_size + vec_size, hidden_size), jnp.float32)
    params["cls_b_in"] = scale * jax.random.normal(nxt(), (hidden_size,), jnp.float32)
    params["cls_hidden"] = [
        (scale * jax.random.normal(nxt(), (hidden_size, hidden_size), jnp.float32),
         scale * jax.random.normal(nxt(), (hidden_size,), jnp.float32))
        for _ in range(num_layers - 1)
    ]
    params["cls_w_out"] = scale * jax.random.normal(nxt(), (hidden_size, 1), jnp.float32)
    params["cls_b_out"] = scale * jax.random.normal(nxt(), (1,), jnp.float32)
    return params


def reference_forward(word_features_batch, vec_features_batch, params):
    """Pure-f32 JAX reference mirroring the PyTorch forward exactly (true concat)."""
    embs = [jnp.take(tbl, word_features_batch[:, i], axis=0)
            for i, tbl in enumerate(params["embeddings"])]
    x = jnp.concatenate(embs, axis=1)
    h = jnp.maximum(x @ params["enc_w1"] + params["enc_b1"], 0.0)
    enc = h @ params["enc_w2"] + params["enc_b2"]
    feats = jnp.concatenate([enc, vec_features_batch], axis=1)
    v = feats @ params["cls_w_in"] + params["cls_b_in"]
    for (w, b) in params["cls_hidden"]:
        v = jnp.maximum(v, 0.0)
        v = v @ w + b
    v = jnp.maximum(v, 0.0)
    out = v @ params["cls_w_out"] + params["cls_b_out"]
    return out.reshape(vec_features_batch.shape[0])


def reference_forward_mixed(word_features_batch, vec_features_batch, prep):
    """Reference mirroring the kernel's folds + bf16-operand / f32-accumulate math."""
    f32, bf16 = jnp.float32, jnp.bfloat16
    idx = word_features_batch.astype(jnp.int32) + prep["offsets"][None, :]
    tbl = prep["tbl_t"].T                                          # (Kp, H) bf16
    emb = jnp.zeros((idx.shape[0], tbl.shape[1]), f32)
    for i in range(idx.shape[1]):
        emb = emb + jnp.take(tbl, idx[:, i], axis=0).astype(f32)
    h = jnp.maximum(emb + prep["b1"].reshape(1, -1), 0.0)
    v = (jnp.dot(h.astype(bf16), prep["wa"].T, preferred_element_type=f32)
         + jnp.dot(vec_features_batch.astype(bf16), prep["wv"].T, preferred_element_type=f32)
         + prep["b_in"].reshape(1, -1))
    for (w, b) in prep["hidden"]:
        v = jnp.dot(jnp.maximum(v, 0.0).astype(bf16), w.T,
                    preferred_element_type=f32) + b.reshape(1, -1)
    v = jnp.maximum(v, 0.0)
    out = jnp.dot(v.astype(bf16), prep["w_out8"][0].reshape(-1, 1),
                  preferred_element_type=f32) + prep["b_out"][0, 0]
    return out.reshape(-1)


if __name__ == "__main__":
    vocab_sizes = [11, 23, 37]   # word_features_vocab_sizes
    vec_size = 4                 # vec_features_size
    hidden_size = 32             # hidden_size
    num_layers = 2               # num_layers (DNNScorer)
    batch = 8

    key = jax.random.PRNGKey(0)
    k_wf, k_vf = jax.random.split(key)
    word_features = jnp.stack(
        [jax.random.randint(jax.random.fold_in(k_wf, i), (batch,), 0, v)
         for i, v in enumerate(vocab_sizes)], axis=1).astype(jnp.int32)     # [B, 3]
    vec_features = jax.random.normal(k_vf, (batch, vec_size), jnp.float32)  # [B, 4]

    params = init_params(vocab_sizes, vec_size, hidden_size, num_layers, seed=0)
    prep = prepare_params(params)    # folds computed once, reused across forward calls

    scores = features_dnn_evaluator_forward(word_features, vec_features, prep)
    scores = jax.block_until_ready(scores)
    assert scores.shape == (batch,), scores.shape

    # Tight check vs a reference matching the kernel's folds + mixed precision.
    ref_mixed = reference_forward_mixed(word_features, vec_features, prep)
    assert jnp.allclose(scores, ref_mixed, atol=2e-3, rtol=2e-3), (scores, ref_mixed)

    # Loose check vs the pure-f32 PyTorch-equivalent math (bf16 matmul drift only).
    ref_f32 = reference_forward(word_features, vec_features, params)
    assert jnp.allclose(scores, ref_f32, atol=5e-2, rtol=5e-2), (scores, ref_f32)

    # Exercise the grid: multiple (even count) tiles + batch padding path.
    batch2 = 300
    k2_wf, k2_vf = jax.random.split(jax.random.PRNGKey(1))
    word2 = jnp.stack(
        [jax.random.randint(jax.random.fold_in(k2_wf, i), (batch2,), 0, v)
         for i, v in enumerate(vocab_sizes)], axis=1).astype(jnp.int32)
    vec2 = jax.random.normal(k2_vf, (batch2, vec_size), jnp.float32)
    scores2 = jax.block_until_ready(
        features_dnn_evaluator_forward(word2, vec2, prep, tile_batch=128))
    ref2 = reference_forward_mixed(word2, vec2, prep)
    assert scores2.shape == (batch2,), scores2.shape
    assert jnp.allclose(scores2, ref2, atol=2e-3, rtol=2e-3), (scores2, ref2)

    print("KERNEL_OK")
</pallas_src>

<mosaic_0001>
module attributes {stable_mosaic.version = 11 : i64} {
  func.func @kernel(%arg0: i32, %arg1: memref<3x128xi32, #tpu.memory_space<vmem>>, %arg2: memref<4x128xbf16, #tpu.memory_space<vmem>>, %arg3: memref<32x72xbf16, #tpu.memory_space<vmem>>, %arg4: memref<32x1xf32, #tpu.memory_space<vmem>>, %arg5: memref<32x32xbf16, #tpu.memory_space<vmem>>, %arg6: memref<32x4xbf16, #tpu.memory_space<vmem>>, %arg7: memref<32x1xf32, #tpu.memory_space<vmem>>, %arg8: memref<32x32xbf16, #tpu.memory_space<vmem>>, %arg9: memref<32x1xf32, #tpu.memory_space<vmem>>, %arg10: memref<8x32xbf16, #tpu.memory_space<vmem>>, %arg11: memref<1x1xf32, #tpu.memory_space<vmem>>, %arg12: memref<1x128xf32, #tpu.memory_space<vmem>>) attributes {dimension_semantics = [#tpu.dimension_semantics<parallel>], iteration_bounds = array<i64: 1>, scalar_prefetch = 0 : i64, scratch_operands = 0 : i64, tpu.core_type = #tpu.core_type<tc>, window_params = [{transform_indices = @transform_0, window_bounds = array<i64: 3, 128>}, {transform_indices = @transform_1, window_bounds = array<i64: 4, 128>}, {pipeline_mode = #tpu.pipeline_mode<synchronous>, transform_indices = @transform_2, window_bounds = array<i64: 32, 72>}, {pipeline_mode = #tpu.pipeline_mode<synchronous>, transform_indices = @transform_3, window_bounds = array<i64: 32, 1>}, {pipeline_mode = #tpu.pipeline_mode<synchronous>, transform_indices = @transform_4, window_bounds = array<i64: 32, 32>}, {pipeline_mode = #tpu.pipeline_mode<synchronous>, transform_indices = @transform_5, window_bounds = array<i64: 32, 4>}, {pipeline_mode = #tpu.pipeline_mode<synchronous>, transform_indices = @transform_6, window_bounds = array<i64: 32, 1>}, {pipeline_mode = #tpu.pipeline_mode<synchronous>, transform_indices = @transform_7, window_bounds = array<i64: 32, 32>}, {pipeline_mode = #tpu.pipeline_mode<synchronous>, transform_indices = @transform_8, window_bounds = array<i64: 32, 1>}, {pipeline_mode = #tpu.pipeline_mode<synchronous>, transform_indices = @transform_9, window_bounds = array<i64: 8, 32>}, {pipeline_mode = #tpu.pipeline_mode<synchronous>, transform_indices = @transform_10, window_bounds = array<i64: 1, 1>}, {transform_indices = @transform_11, window_bounds = array<i64: 1, 128>}]} {
    %c0 = arith.constant 0 : index
    %c0_0 = arith.constant 0 : index
    %0 = vector.load %arg1[%c0, %c0_0] : memref<3x128xi32, #tpu.memory_space<vmem>>, vector<3x128xi32>
    %1 = tpu.iota {dimensions = array<i32: 0>} : vector<72x128xi32>
    %2 = vector.extract_strided_slice %0 {offsets = [0, 0], sizes = [1, 128], strides = [1, 1]} : vector<3x128xi32> to vector<1x128xi32>
    %3 = vector.broadcast %2 : vector<1x128xi32> to vector<72x128xi32>
    %4 = arith.cmpi eq, %1, %3 : vector<72x128xi32>
    %5 = vector.extract_strided_slice %0 {offsets = [1, 0], sizes = [1, 128], strides = [1, 1]} : vector<3x128xi32> to vector<1x128xi32>
    %6 = vector.broadcast %5 : vector<1x128xi32> to vector<72x128xi32>
    %7 = arith.cmpi eq, %1, %6 : vector<72x128xi32>
    %8 = arith.ori %4, %7 : vector<72x128xi1>
    %9 = vector.extract_strided_slice %0 {offsets = [2, 0], sizes = [1, 128], strides = [1, 1]} : vector<3x128xi32> to vector<1x128xi32>
    %10 = vector.broadcast %9 : vector<1x128xi32> to vector<72x128xi32>
    %11 = arith.cmpi eq, %1, %10 : vector<72x128xi32>
    %12 = arith.ori %8, %11 : vector<72x128xi1>
    %cst = arith.constant 1.000000e+00 : f32
    %cst_1 = arith.constant 0.000000e+00 : f32
    %13 = vector.broadcast %cst : f32 to vector<72x128xf32>
    %14 = vector.broadcast %cst_1 : f32 to vector<72x128xf32>
    %15 = arith.select %12, %13, %14 : vector<72x128xi1>, vector<72x128xf32>
    %16 = arith.truncf %15 : vector<72x128xf32> to vector<72x128xbf16>
    %c0_2 = arith.constant 0 : index
    %c0_3 = arith.constant 0 : index
    %17 = vector.load %arg3[%c0_2, %c0_3] : memref<32x72xbf16, #tpu.memory_space<vmem>>, vector<32x72xbf16>
    %cst_4 = arith.constant dense<0.000000e+00> : vector<32x128xf32>
    %18 = tpu.matmul %17, %16, %cst_4 {dimension_numbers = #tpu.dot_dimension_numbers<[1], [0], [0], [1], [0, 0, 1, 1], [], []>} : vector<32x72xbf16>, vector<72x128xbf16>, vector<32x128xf32> -> vector<32x128xf32>
    %c0_5 = arith.constant 0 : index
    %c0_6 = arith.constant 0 : index
    %19 = vector.load %arg4[%c0_5, %c0_6] : memref<32x1xf32, #tpu.memory_space<vmem>>, vector<32x1xf32>
    %20 = vector.broadcast %19 : vector<32x1xf32> to vector<32x128xf32>
    %21 = arith.addf %18, %20 : vector<32x128xf32>
    %cst_7 = arith.constant 0.000000e+00 : f32
    %22 = vector.broadcast %cst_7 : f32 to vector<32x128xf32>
    %23 = arith.maximumf %21, %22 : vector<32x128xf32>
    %c0_8 = arith.constant 0 : index
    %c0_9 = arith.constant 0 : index
    %24 = vector.load %arg5[%c0_8, %c0_9] : memref<32x32xbf16, #tpu.memory_space<vmem>>, vector<32x32xbf16>
    %25 = arith.truncf %23 : vector<32x128xf32> to vector<32x128xbf16>
    %cst_10 = arith.constant dense<0.000000e+00> : vector<32x128xf32>
    %26 = tpu.matmul %24, %25, %cst_10 {dimension_numbers = #tpu.dot_dimension_numbers<[1], [0], [0], [1], [0, 0, 1, 1], [], []>} : vector<32x32xbf16>, vector<32x128xbf16>, vector<32x128xf32> -> vector<32x128xf32>
    %c0_11 = arith.constant 0 : index
    %c0_12 = arith.constant 0 : index
    %27 = vector.load %arg6[%c0_11, %c0_12] : memref<32x4xbf16, #tpu.memory_space<vmem>>, vector<32x4xbf16>
    %c0_13 = arith.constant 0 : index
    %c0_14 = arith.constant 0 : index
    %28 = vector.load %arg2[%c0_13, %c0_14] : memref<4x128xbf16, #tpu.memory_space<vmem>>, vector<4x128xbf16>
    %cst_15 = arith.constant dense<0.000000e+00> : vector<32x128xf32>
    %29 = tpu.matmul %27, %28, %cst_15 {dimension_numbers = #tpu.dot_dimension_numbers<[1], [0], [0], [1], [0, 0, 1, 1], [], []>} : vector<32x4xbf16>, vector<4x128xbf16>, vector<32x128xf32> -> vector<32x128xf32>
    %30 = arith.addf %26, %29 : vector<32x128xf32>
    %c0_16 = arith.constant 0 : index
    %c0_17 = arith.constant 0 : index
    %31 = vector.load %arg7[%c0_16, %c0_17] : memref<32x1xf32, #tpu.memory_space<vmem>>, vector<32x1xf32>
    %32 = vector.broadcast %31 : vector<32x1xf32> to vector<32x128xf32>
    %33 = arith.addf %30, %32 : vector<32x128xf32>
    %c0_18 = arith.constant 0 : index
    %c0_19 = arith.constant 0 : index
    %34 = vector.load %arg8[%c0_18, %c0_19] : memref<32x32xbf16, #tpu.memory_space<vmem>>, vector<32x32xbf16>
    %c0_20 = arith.constant 0 : index
    %c0_21 = arith.constant 0 : index
    %35 = vector.load %arg9[%c0_20, %c0_21] : memref<32x1xf32, #tpu.memory_space<vmem>>, vector<32x1xf32>
    %cst_22 = arith.constant 0.000000e+00 : f32
    %36 = vector.broadcast %cst_22 : f32 to vector<32x128xf32>
    %37 = arith.maximumf %33, %36 : vector<32x128xf32>
    %38 = arith.truncf %37 : vector<32x128xf32> to vector<32x128xbf16>
    %cst_23 = arith.constant dense<0.000000e+00> : vector<32x128xf32>
    %39 = tpu.matmul %34, %38, %cst_23 {dimension_numbers = #tpu.dot_dimension_numbers<[1], [0], [0], [1], [0, 0, 1, 1], [], []>} : vector<32x32xbf16>, vector<32x128xbf16>, vector<32x128xf32> -> vector<32x128xf32>
    %40 = vector.broadcast %35 : vector<32x1xf32> to vector<32x128xf32>
    %41 = arith.addf %39, %40 : vector<32x128xf32>
    %cst_24 = arith.constant 0.000000e+00 : f32
    %42 = vector.broadcast %cst_24 : f32 to vector<32x128xf32>
    %43 = arith.maximumf %41, %42 : vector<32x128xf32>
    %c0_25 = arith.constant 0 : index
    %c0_26 = arith.constant 0 : index
    %44 = vector.load %arg10[%c0_25, %c0_26] : memref<8x32xbf16, #tpu.memory_space<vmem>>, vector<8x32xbf16>
    %45 = arith.truncf %43 : vector<32x128xf32> to vector<32x128xbf16>
    %cst_27 = arith.constant dense<0.000000e+00> : vector<8x128xf32>
    %46 = tpu.matmul %44, %45, %cst_27 {dimension_numbers = #tpu.dot_dimension_numbers<[1], [0], [0], [1], [0, 0, 1, 1], [], []>} : vector<8x32xbf16>, vector<32x128xbf16>, vector<8x128xf32> -> vector<8x128xf32>
    %47 = vector.extract_strided_slice %46 {offsets = [0, 0], sizes = [1, 128], strides = [1, 1]} : vector<8x128xf32> to vector<1x128xf32>
    %c0_28 = arith.constant 0 : index
    %c0_29 = arith.constant 0 : index
    %48 = vector.load %arg11[%c0_28, %c0_29] : memref<1x1xf32, #tpu.memory_space<vmem>>, vector<1x1xf32>
    %49 = vector.broadcast %48 : vector<1x1xf32> to vector<1x128xf32>
    %50 = arith.addf %47, %49 : vector<1x128xf32>
    %c0_30 = arith.constant 0 : index
    %c0_31 = arith.constant 0 : index
    %51 = vector.load %arg12[%c0_30, %c0_31] : memref<1x128xf32, #tpu.memory_space<vmem>>, vector<1x128xf32>
    tpu.vector_store %arg12[%c0_30, %c0_31], %50 {strides = array<i32>} : memref<1x128xf32, #tpu.memory_space<vmem>>, vector<1x128xf32>,
    return
  }
  func.func @transform_0(%arg0: i32) -> (i32, i32) {
    %c0_i32 = arith.constant 0 : i32
    %c0_i32_0 = arith.constant 0 : i32
    return %c0_i32, %arg0 : i32, i32
  }
  func.func @transform_1(%arg0: i32) -> (i32, i32) {
    %c0_i32 = arith.constant 0 : i32
    %c0_i32_0 = arith.constant 0 : i32
    return %c0_i32, %arg0 : i32, i32
  }
  func.func @transform_2(%arg0: i32) -> (i32, i32) {
    %c0_i32 = arith.constant 0 : i32
    %c0_i32_0 = arith.constant 0 : i32
    %c0_i32_1 = arith.constant 0 : i32
    return %c0_i32, %c0_i32_0 : i32, i32
  }
  func.func @transform_3(%arg0: i32) -> (i32, i32) {
    %c0_i32 = arith.constant 0 : i32
    %c0_i32_0 = arith.constant 0 : i32
    %c0_i32_1 = arith.constant 0 : i32
    return %c0_i32, %c0_i32_0 : i32, i32
  }
  func.func @transform_4(%arg0: i32) -> (i32, i32) {
    %c0_i32 = arith.constant 0 : i32
    %c0_i32_0 = arith.constant 0 : i32
    %c0_i32_1 = arith.constant 0 : i32
    return %c0_i32, %c0_i32_0 : i32, i32
  }
  func.func @transform_5(%arg0: i32) -> (i32, i32) {
    %c0_i32 = arith.constant 0 : i32
    %c0_i32_0 = arith.constant 0 : i32
    %c0_i32_1 = arith.constant 0 : i32
    return %c0_i32, %c0_i32_0 : i32, i32
  }
  func.func @transform_6(%arg0: i32) -> (i32, i32) {
    %c0_i32 = arith.constant 0 : i32
    %c0_i32_0 = arith.constant 0 : i32
    %c0_i32_1 = arith.constant 0 : i32
    return %c0_i32, %c0_i32_0 : i32, i32
  }
  func.func @transform_7(%arg0: i32) -> (i32, i32) {
    %c0_i32 = arith.constant 0 : i32
    %c0_i32_0 = arith.constant 0 : i32
    %c0_i32_1 = arith.constant 0 : i32
    return %c0_i32, %c0_i32_0 : i32, i32
  }
  func.func @transform_8(%arg0: i32) -> (i32, i32) {
    %c0_i32 = arith.constant 0 : i32
    %c0_i32_0 = arith.constant 0 : i32
    %c0_i32_1 = arith.constant 0 : i32
    return %c0_i32, %c0_i32_0 : i32, i32
  }
  func.func @transform_9(%arg0: i32) -> (i32, i32) {
    %c0_i32 = arith.constant 0 : i32
    %c0_i32_0 = arith.constant 0 : i32
    %c0_i32_1 = arith.constant 0 : i32
    return %c0_i32, %c0_i32_0 : i32, i32
  }
  func.func @transform_10(%arg0: i32) -> (i32, i32) {
    %c0_i32 = arith.constant 0 : i32
    %c0_i32_0 = arith.constant 0 : i32
    %c0_i32_1 = arith.constant 0 : i32
    return %c0_i32, %c0_i32_0 : i32, i32
  }
  func.func @transform_11(%arg0: i32) -> (i32, i32) {
    %c0_i32 = arith.constant 0 : i32
    %c0_i32_0 = arith.constant 0 : i32
    return %arg0, %c0_i32 : i32, i32
  }
}

</mosaic_0001>

<bundles_post_ra>
// kernel: features_dnn_evaluator_forward.1
= control target key start
LH: loop header
LB: loop body
LE: loop exit
PB: predicated region body
PF: predicated region fallthrough
CT: control target
= control target key end

     0   :  { %v42_v0 = vlaneseq  ;;  %v469_v7 = vmov 0   ;;  %v470_v15 = vmov 0.0   ;;  %vm159_vm10 = vcmask 1043456   ;;  %s680_s0 = inlined_call_operand.vmem [shape: s32[3,128], index: 0, kind: input, shape index: {}]   ;;  %s681_s3 = inlined_call_operand.vmem [shape: f32[32,1], index: 3, kind: input, shape index: {}]   ;;  %s682_s6 = inlined_call_operand.vmem [shape: f32[32,1], index: 6, kind: input, shape index: {}]   ;;  %s683_s10 = inlined_call_operand.<no memory space> [shape: f32[1,1], index: 10, kind: input, shape index: {}]   ;;  %s684_s8 = inlined_call_operand.vmem [shape: f32[32,1], index: 8, kind: input, shape index: {}]   ;;  %s685_s2 = inlined_call_operand.vmem [shape: bf16[32,72], index: 2, kind: input, shape index: {}]   ;;  %s686_s1 = inlined_call_operand.vmem [shape: bf16[4,128], index: 1, kind: input, shape index: {}]   ;;  %s687_s5 = inlined_call_operand.vmem [shape: bf16[32,4], index: 5, kind: input, shape index: {}]   ;;  %s688_s4 = inlined_call_operand.vmem [shape: bf16[32,32], index: 4, kind: input, shape index: {}]   ;;  %s689_s7 = inlined_call_operand.vmem [shape: bf16[32,32], index: 7, kind: input, shape index: {}]   ;;  %s690_s9 = inlined_call_operand.vmem [shape: bf16[8,32], index: 9, kind: input, shape index: {}]   ;;  %s691_s11 = inlined_call_operand.vmem [shape: f32[1,128], index: 11, kind: output, shape index: {}]  }
   0x1   :  { %v41_v1 = vld [vmem:[%s680_s0] sm:$0x7]  ;;  %v120_v2 = vld [vmem:[%s681_s3 + $0x10] sm:$0xff]  ;;  %466 = vset.pattern.permute.xlu0 %v469_v7  ;;  %467 = vset.pattern.permute.xlu1 %v469_v7  ;;  %v121_v14 = vld [vmem:[%s681_s3 + $0x18] sm:$0xff]  ;;  %v16_v26 = vstv %s683_s10  ;;  %v471_v27 = vmov 1.0|1.0  }
   0x2   :  { %v538_v3 = vshrl.u32 %v42_v0, 7  ;;  %v540_v4 = vperm.slane %v41_v1, 0  ;;  %v542_v5 = vperm.slane %v41_v1, 1  ;;  %v544_v6 = vperm.slane %v41_v1, 2  ;;  %v118_v8 = vld [vmem:[%s681_s3] sm:$0xff]  ;;  %134 = vperm.xlu0 %466, %v120_v2   ;;  %468 = vset.pattern.permute.xlu2 %v469_v7  ;;  %v119_v17 = vld [vmem:[%s681_s3 + $0x8] sm:$0xff] }
   0x3   :  { %124 = vperm.xlu1 %467, %v118_v8   ;;  %v273_v25 = vld [vmem:[%s682_s6] sm:$0xff]  ;;  %v274_v28 = vld [vmem:[%s682_s6 + $0x8] sm:$0xff]  ;;  %17 = vst [vmem:[#allocation2] sm:$0x1] %v16_v26  ;;  %v308_v30 = vld [vmem:[%s684_s8 + $0x18] sm:$0xff] }
   0x4   :  { %v51_v9 = vadd.s32 64, %v538_v3  ;;  %v49_v10 = vadd.s32 48, %v538_v3  ;;  %v50_v11 = vadd.s32 56, %v538_v3  ;;  %v47_v12 = vadd.s32 32, %v538_v3  ;;  %v305_v31 = vld [vmem:[%s684_s8] sm:$0xff]  ;;  %v456_v34 = vld [vmem:[%s685_s2 + $0x8] sm:$0xff] }
   0x5   :  { %v48_v13 = vadd.s32 40, %v538_v3  ;;  %v45_v22 = vadd.s32 16, %v538_v3  ;;  %v46_v23 = vadd.s32 24, %v538_v3  ;;  %v44_v29 = vadd.s32 8, %v538_v3  ;;  %v455_v32 = vld [vmem:[%s685_s2] sm:$0xff]  ;;  %v460_v43 = vld [vmem:[%s687_s5 + $0x8] sm:$0xff] }
   0x6   :  { %vm61_vm0 = vcmp.eq.s32.totalorder %v51_v9, %v540_v4  ;;  %vm71_vm1 = vcmp.eq.s32.totalorder %v51_v9, %v542_v5  ;;  %vm90_vm2 = vcmp.eq.s32.totalorder %v51_v9, %v544_v6  ;;  %vm59_vm3 = vcmp.eq.s32.totalorder %v49_v10, %v540_v4  ;;  %v196_v35 = vld [vmem:[%s686_s1] sm:$0x3]  ;;  %v275_v44 = vld [vmem:[%s682_s6 + $0x10] sm:$0xff]  ;;  %v276_v54 = vld [vmem:[%s682_s6 + $0x18] sm:$0xff] }
   0x7   :  { %vm80_vm4 = vmor %vm61_vm0, %vm71_vm1  ;;  %vm60_vm5 = vcmp.eq.s32.totalorder %v50_v11, %v540_v4  ;;  %vm69_vm6 = vcmp.eq.s32.totalorder %v49_v10, %v542_v5  ;;  %vm70_vm7 = vcmp.eq.s32.totalorder %v50_v11, %v542_v5  ;;  %vm88_vm9 = vcmp.eq.s32.totalorder %v49_v10, %v544_v6  ;;  %v459_v38 = vld [vmem:[%s687_s5] sm:$0xff]  ;;  %289 = vperm.xlu2 %468, %v275_v44   ;;  %v307_v60 = vld [vmem:[%s684_s8 + $0x10] sm:$0xff] }
   0x8   :  { %vm99_vm8 = vmor %vm80_vm4, %vm90_vm2  ;;  %vm89_vm12 = vcmp.eq.s32.totalorder %v50_v11, %v544_v6  ;;  %vm57_vm15 = vcmp.eq.s32.totalorder %v47_v12, %v540_v4  ;;  %vm67_vm0 = vcmp.eq.s32.totalorder %v47_v12, %v542_v5  ;;  %vm58_vm2 = vcmp.eq.s32.totalorder %v48_v13, %v540_v4  ;;  %v457_v59 = vld [vmem:[%s688_s4] sm:$0xff]  ;;  %v306_v61 = vld [vmem:[%s684_s8 + $0x8] sm:$0xff] }
   0x9   :  { %v108_v16 = vsel %vm99_vm8, 1.0, %v470_v15  ;;  %vm78_vm11 = vmor %vm59_vm3, %vm69_vm6  ;;  %vm68_vm3 = vcmp.eq.s32.totalorder %v48_v13, %v542_v5  ;;  %v458_v62 = vld [vmem:[%s688_s4 + $0x8] sm:$0xff] }
   0xa   :  { %v113_v18 = vpack.c.bf16 %v108_v16, %v108_v16  ;;  %vm79_vm13 = vmor %vm60_vm5, %vm70_vm7  ;;  %139 = vperm.xlu0 %466, %v121_v14   ;;  %vm86_vm5 = vcmp.eq.s32.totalorder %v47_v12, %v544_v6  ;;  %vm87_vm7 = vcmp.eq.s32.totalorder %v48_v13, %v544_v6  ;;  %v393_v33 = vld [vmem:[#allocation2] sm:$0x1]  ;;  %v462_v26 = vld [vmem:[%s689_s7 + $0x8] sm:$0xff] }
   0xb   :  { %vm571_vm14 = vmor %vm78_vm11, %vm88_vm9  ;;  %129 = vperm.xlu1 %467, %v119_v17   ;;  %vm65_vm11 = vcmp.eq.s32.totalorder %v45_v22, %v542_v5 }
   0xc   :  { %v161_v20 = vsel %vm159_vm10, %v113_v18, 0  ;;  %vm577_vm1 = vmor %vm79_vm13, %vm89_vm12  ;;  %vm55_vm10 = vcmp.eq.s32.totalorder %v45_v22, %v540_v4  ;;  %vm56_vm13 = vcmp.eq.s32.totalorder %v46_v23, %v540_v4 }
   0xd   :  { %166 = vmatpush.bf16.msra.mxu0 %v161_v20  ;;  %vm414_vm4 = vmpackc.low %vm577_vm1, %vm571_vm14  ;;  %vm66_vm14 = vcmp.eq.s32.totalorder %v46_v23, %v542_v5 }
   0xe   :  { %vm76_vm6 = vmor %vm57_vm15, %vm67_vm0  ;;  %vm84_vm0 = vcmp.eq.s32.totalorder %v45_v22, %v544_v6 }
   0xf   :  { %vm77_vm8 = vmor %vm58_vm2, %vm68_vm3  ;;  %vm85_vm2 = vcmp.eq.s32.totalorder %v46_v23, %v544_v6  ;;  %294 = vperm.xlu2 %468, %v276_v54  }
  0x10   :  { %vm593_vm9 = vmor %vm76_vm6, %vm86_vm5  ;;  %vm53_vm5 = vcmp.eq.s32.totalorder %v538_v3, %v540_v4  ;;  %vm63_vm6 = vcmp.eq.s32.totalorder %v538_v3, %v542_v5 }
  0x11   :  { %415 = vmatpush.bf16.msk.msra.mxu0 %vm414_vm4, %v471_v27  ;;  %vm96_vm12 = vmor %vm77_vm8, %vm87_vm7  ;;  %vm54_vm8 = vcmp.eq.s32.totalorder %v44_v29, %v540_v4 }
  0x12   :  { %vm416_vm15 = vmpackc.low %vm96_vm12, %vm593_vm9  ;;  %279 = vperm.xlu0 %466, %v273_v25   ;;  %vm64_vm9 = vcmp.eq.s32.totalorder %v44_v29, %v542_v5  ;;  %v461_v25 = vld [vmem:[%s689_s7] sm:$0xff] }
  0x13   :  { %vm74_vm1 = vmor %vm55_vm10, %vm65_vm11  ;;  %284 = vperm.xlu1 %467, %v274_v28   ;;  %vm82_vm10 = vcmp.eq.s32.totalorder %v538_v3, %v544_v6 }
  0x14   :  { %vm75_vm3 = vmor %vm56_vm13, %vm66_vm14  ;;  %vm83_vm13 = vcmp.eq.s32.totalorder %v44_v29, %v544_v6 }
  0x15   :  { %417 = vmatpush.bf16.msk.msra.mxu0 %vm416_vm15, %v471_v27  ;;  %vm93_vm4 = vmor %vm74_vm1, %vm84_vm0 }
  0x16   :  { %vm94_vm7 = vmor %vm75_vm3, %vm85_vm2  ;;  %vm152_vm2 = vcmask 588800   ;;  %vm214_vm3 = vcmask 1041408  }
  0x17   :  { %vm418_vm12 = vmpackc.low %vm94_vm7, %vm93_vm4  ;;  %v216_v37 = vsel %vm214_vm3, %v196_v35, 0  ;;  %vm207_vm4 = vcmask 31744   ;;  %327 = vperm.xlu2 %468, %v307_v60  }
  0x18   :  { %vm72_vm11 = vmor %vm53_vm5, %vm63_vm6  ;;  %225 = vmatpush.bf16.msra.mxu1 %v216_v37  ;;  %vm247_vm5 = vcmask 261120  }
  0x19   :  { %419 = vmatpush.bf16.msk.msra.mxu0 %vm418_vm12, %v471_v27  ;;  %vm73_vm14 = vmor %vm54_vm8, %vm64_vm9 }
  0x1a   :  { %vm91_vm15 = vmor %vm72_vm11, %vm82_vm10  ;;  %332 = vperm.xlu0 %466, %v308_v30  }
  0x1b   :  { %vm92_vm0 = vmor %vm73_vm14, %vm83_vm13  ;;  %317 = vperm.xlu1 %467, %v305_v31   ;;  %432 = vmatmul.msk.bf16.vlgmr.msra.gmra.mxu1 %vm207_vm4, %v459_v38 }
  0x1c   :  { %vm420_vm1 = vmpackc.low %vm92_vm0, %vm91_vm15 }
  0x1d   :  { %421 = vmatpush.bf16.msk.msra.mxu0 %vm420_vm1, %v471_v27 }
  0x1f   :  { %322 = vperm.xlu2 %468, %v306_v61  }
  0x20   :  { %422 = vmatmul.msk.bf16.vlgmr.msra.gmra.mxu0 %vm152_vm2, %v455_v32 }
  0x22   :  { %396 = vperm.xlu0 %466, %v393_v33  }
  0x2b   :  { %433 = vmatmul.msk.bf16.gmra.mxu1 %vm207_vm4, %v460_v43 }
  0x30   :  { %423 = vmatmul.msk.bf16.gmra.mxu0 %vm152_vm2, %v456_v34 }
  0x61   :  { %v290_v4 = vpop.permute.xlu2 %289 }
  0x69   :  { %v295_v14 = vpop.permute.xlu2 %294 }
  0x71   :  { %v328_v29 = vpop.permute.xlu2 %327 }
  0x74   :  { %v135_v40 = vpop.permute.xlu0 %134 }
  0x75   :  { %v125_v41 = vpop.permute.xlu1 %124 }
  0x79   :  { %v323_v33 = vpop.permute.xlu2 %322 }
  0x7c   :  { %v140_v45 = vpop.permute.xlu0 %139 }
  0x7d   :  { %v130_v47 = vpop.permute.xlu1 %129 }
  0x84   :  { %v280_v17 = vpop.permute.xlu0 %279 }
  0x85   :  { %v285_v13 = vpop.permute.xlu1 %284 }
  0x8c   :  { %v333_v31 = vpop.permute.xlu0 %332 }
  0x8d   :  { %v318_v37 = vpop.permute.xlu1 %317 }
  0x98   :  { %v227_v63 = vpop.f32.mrf.mxu1 }
  0x9d   :  { %v172_v36 = vpop.f32.mrf.mxu0 }
  0x9e   :  { %v173_v51 = vadd.f32 %v172_v36, %v125_v41 }
  0xa0   :  { %v182_v57 = vmax.f32 %v173_v51, 0.0  ;;  %v229_v1 = vpop.f32.mrf.mxu1 }
  0xa5   :  { %v174_v39 = vpop.f32.mrf.mxu0 }
  0xa6   :  { %v175_v49 = vadd.f32 %v174_v39, %v130_v47 }
  0xa8   :  { %v183_v55 = vmax.f32 %v175_v49, 0.0  ;;  %v232_v3 = vpop.f32.mrf.mxu1 }
  0xaa   :  { %v190_v58 = vpack.c.bf16 %v183_v55, %v182_v57 }
  0xad   :  { %v177_v42 = vpop.f32.mrf.mxu0 }
  0xae   :  { %v178_v46 = vadd.f32 %v177_v42, %v135_v40 }
  0xb0   :  { %v184_v52 = vmax.f32 %v178_v46, 0.0  ;;  %v234_v8 = vpop.f32.mrf.mxu1  ;;  %v397_v46 = vpop.permute.xlu0 %396 }
  0xb1   :  { %v399_v47 = vperm.slane %v397_v46, 0 }
  0xb5   :  { %v179_v48 = vpop.f32.mrf.mxu0 }
  0xb6   :  { %v180_v50 = vadd.f32 %v179_v48, %v140_v45  ;;  %v374_v45 = vld [vmem:[%s690_s9] sm:$0xf] }
  0xb8   :  { %v185_v53 = vmax.f32 %v180_v50, 0.0 }
  0xba   :  { %v191_v56 = vpack.c.bf16 %v185_v53, %v184_v52 }
  0xbc   :  { %260 = vmatpush.bf16.msra.mxu2 %v191_v56 }
  0xc0   :  { %261 = vmatpush.bf16.msra.mxu2 %v190_v58 }
  0xc3   :  { %442 = vmatmul.msk.bf16.vlgmr.msra.gmra.mxu2 %vm247_vm5, %v457_v59 }
  0xd3   :  { %443 = vmatmul.msk.bf16.gmra.mxu2 %vm247_vm5, %v458_v62 }
 0x146   :  { %v263_v0 = vpop.f32.mrf.mxu2 }
 0x147   :  { %v264_v10 = vadd.f32 %v263_v0, %v227_v63 }
 0x149   :  { %v297_v18 = vadd.f32 %v280_v17, %v264_v10 }
 0x14b   :  { %v309_v23 = vmax.f32 %v297_v18, 0.0 }
 0x14e   :  { %v265_v2 = vpop.f32.mrf.mxu2 }
 0x14f   :  { %v266_v7 = vadd.f32 %v265_v2, %v229_v1 }
 0x151   :  { %v298_v15 = vadd.f32 %v285_v13, %v266_v7 }
 0x153   :  { %v310_v21 = vmax.f32 %v298_v15, 0.0 }
 0x155   :  { %v313_v24 = vpack.c.bf16 %v310_v21, %v309_v23 }
 0x156   :  { %v268_v5 = vpop.f32.mrf.mxu2 }
 0x157   :  { %v269_v6 = vadd.f32 %v268_v5, %v232_v3 }
 0x159   :  { %v299_v12 = vadd.f32 %v290_v4, %v269_v6 }
 0x15b   :  { %v311_v19 = vmax.f32 %v299_v12, 0.0 }
 0x15e   :  { %v270_v9 = vpop.f32.mrf.mxu2 }
 0x15f   :  { %v271_v11 = vadd.f32 %v270_v9, %v234_v8 }
 0x161   :  { %v300_v16 = vadd.f32 %v295_v14, %v271_v11 }
 0x163   :  { %v312_v20 = vmax.f32 %v300_v16, 0.0 }
 0x165   :  { %v314_v22 = vpack.c.bf16 %v312_v20, %v311_v19 }
 0x167   :  { %357 = vmatpush.bf16.msra.mxu3 %v314_v22 }
 0x16b   :  { %358 = vmatpush.bf16.msra.mxu3 %v313_v24 }
 0x16e   :  { %452 = vmatmul.msk.bf16.vlgmr.msra.gmra.mxu3 %vm247_vm5, %v461_v25 }
 0x17e   :  { %453 = vmatmul.msk.bf16.gmra.mxu3 %vm247_vm5, %v462_v26 }
 0x1f1   :  { %v360_v27 = vpop.f32.mrf.mxu3 }
 0x1f2   :  { %v361_v38 = vadd.f32 %v360_v27, %v318_v37 }
 0x1f4   :  { %v370_v43 = vmax.f32 %v361_v38, 0.0 }
 0x1f9   :  { %v362_v28 = vpop.f32.mrf.mxu3 }
 0x1fa   :  { %v363_v35 = vadd.f32 %v362_v28, %v323_v33 }
 0x1fc   :  { %v371_v41 = vmax.f32 %v363_v35, 0.0 }
 0x1fe   :  { %v375_v44 = vpack.c.bf16 %v371_v41, %v370_v43 }
 0x201   :  { %v365_v30 = vpop.f32.mrf.mxu3 }
 0x202   :  { %v366_v32 = vadd.f32 %v365_v30, %v328_v29 }
 0x204   :  { %v372_v39 = vmax.f32 %v366_v32, 0.0 }
 0x209   :  { %v367_v34 = vpop.f32.mrf.mxu3 }
 0x20a   :  { %v368_v36 = vadd.f32 %v367_v34, %v333_v31 }
 0x20c   :  { %v373_v40 = vmax.f32 %v368_v36, 0.0 }
 0x20e   :  { %v376_v42 = vpack.c.bf16 %v373_v40, %v372_v39 }
 0x210   :  { %386 = vmatpush.bf16.msrb.mxu1 %v376_v42 }
 0x214   :  { %387 = vmatpush.bf16.msrb.mxu1 %v375_v44 }
 0x217   :  { %454 = vmatmul.msk.bf16.vlgmr.msrb.gmra.mxu1 %vm247_vm5, %v374_v45 }
 0x294   :  { %v389_v48 = vpop.f32.mrf.mxu1 }
 0x295   :  { %v400_v49 = vadd.f32 %v399_v47, %v389_v48 }
 0x297   :  { %401 = vst [vmem:[%s691_s11] sm:$0x1] %v400_v49 }
 0x29c   :  { %v391_v50 = vpop.f32.mrf.mxu1 }

</bundles_post_ra>
